<compile_context>
chip_gen: v5e
topology: v5e:2x2
jax: 0.10.0
libtpu: 0.0.40
codegen_flags: <defaults>
</compile_context>

<pallas_src>
import functools

import jax
import jax.numpy as jnp
from jax import lax
from jax.experimental import pallas as pl
from jax.experimental.pallas import tpu as pltpu


def _focal_pow(base, gamma):
    """base ** gamma, lowered to pure multiplies when gamma is a small int
    (avoids exp/log on the single EUP slot).  Generic path clamps base >= 0 so
    fractional gamma never sees a (fp-noise) negative argument to log."""
    g = float(gamma)
    if g.is_integer() and 0 <= int(g) <= 8:
        gi = int(g)
        if gi == 0:
            return jnp.ones_like(base)
        out = base
        for _ in range(gi - 1):
            out = out * base
        return out
    return jnp.maximum(base, 0.0) ** g


def _focal_kernel(pred_ref, tgt_ref, loss_out_ref, w_out_ref, *,
                  gamma, alpha, hw, tiles_per_chunk):
    p = pl.program_id(1)
    t = pl.program_id(2)
    C, tile = pred_ref.shape                 # squeezed view: (C, tile)

    x = pred_ref[...].astype(jnp.float32)    # (C, tile) logits
    cls = tgt_ref[...].astype(jnp.int32)     # (1, tile) class indices

    # Partial-tile handling (only emitted when HW % tile != 0):
    #  - x MUST be masked before exp/bce (garbage padding logits can be inf/NaN)
    #  - the class-id mask is redundant (int compare is always safe) -> dropped
    #  - the per-element weight mask is replaced by masking the two (1, tile)
    #    channel-reduced sums, which is C x cheaper.
    mask_needed = (hw % tile) != 0
    if mask_needed:
        col = ((p * tiles_per_chunk + t) * tile
               + lax.broadcasted_iota(jnp.int32, (1, tile), 1))
        valid = col < hw                      # (1, tile) bool
        x = jnp.where(valid, x, 0.0)

    # one-hot along the channel (sublane) axis, kept as a bool select mask
    onehot = lax.broadcasted_iota(jnp.int32, x.shape, 0) == cls   # (C, tile)

    # softmax over channels; divide goes to the EUP (approx) + 1 Newton step
    m = jnp.max(x, axis=0, keepdims=True)
    e = jnp.exp(x - m)
    s = jnp.sum(e, axis=0, keepdims=True)
    inv = pl.reciprocal(s, approx=True)
    inv = inv * (2.0 - s * inv)               # Newton refinement -> ~f32 accuracy
    prob = e * inv

    # focal weight via selects (detached in torch; forward value identical):
    #   1 - target_prob  ==  where(onehot, 1 - prob, prob)
    one_minus_pt = jnp.where(onehot, 1.0 - prob, prob)
    alpha_w = jnp.where(onehot, alpha, 1.0 - alpha)
    weight = alpha_w * _focal_pow(one_minus_pt, gamma)

    # numerically-stable BCE with logits (per element, unreduced)
    bce = (jnp.maximum(x, 0.0) - jnp.where(onehot, x, 0.0)
           + jnp.log1p(jnp.exp(-jnp.abs(x))))

    # channel reduction on the XLU; accumulate into lane-dense (1, tile) outputs
    ls = jnp.sum(weight * bce, axis=0, keepdims=True)   # (1, tile)
    ws = jnp.sum(weight, axis=0, keepdims=True)         # (1, tile)
    if mask_needed:
        ls = jnp.where(valid, ls, 0.0)
        ws = jnp.where(valid, ws, 0.0)

    @pl.when(t == 0)
    def _():
        loss_out_ref[...] = ls
        w_out_ref[...] = ws

    @pl.when(t > 0)
    def _():
        loss_out_ref[...] += ls
        w_out_ref[...] += ws


def focal_loss_pallas(prediction, target, gamma=2.0, alpha=0.25,
                      max_tile_hw=16384, vmem_budget_bytes=24 * 1024 * 1024):
    """prediction: (N, C, H, W) float (f32 or bf16); target: (N, 1, H, W) int."""
    N, C, H, W = prediction.shape
    HW = H * W

    # metadata-only reshapes — no transpose, no extra HBM traffic
    pred3 = prediction.reshape(N, C, HW)
    tgt3 = target.reshape(N, 1, HW)

    def _round_up(v, m):
        return ((v + m - 1) // m) * m

    # Explicit VMEM budget per tile column (bytes):
    #   double-buffered pred block  : 2 * C * 4   (f32-equivalent upper bound)
    #   double-buffered target block: 2 * 1 * 4
    #   double-buffered (1,·) outputs (x2): 16
    #   in-kernel f32 intermediates (~8 live (C,·) arrays): 32 * C
    bytes_per_col = 4 * (2 * C + 2) + 16 + 32 * C
    tile = vmem_budget_bytes // bytes_per_col
    tile = min(tile, int(max_tile_hw), _round_up(HW, 128))
    tile = max(128, (tile // 128) * 128)
    num_t = pl.cdiv(HW, tile)

    # v7x megacore: if the batch axis alone can't feed two TensorCores, split
    # the HW-tile range into two parallel chunks (no effect on single-TC chips).
    if N == 1 and num_t >= 2 and num_t % 2 == 0:
        P = 2
    else:
        P = 1
    tpp = num_t // P

    kernel = functools.partial(
        _focal_kernel, gamma=float(gamma), alpha=float(alpha), hw=HW,
        tiles_per_chunk=tpp)

    loss_parts, w_parts = pl.pallas_call(
        kernel,
        out_shape=(
            jax.ShapeDtypeStruct((N, P, 1, tile), jnp.float32),  # loss partials
            jax.ShapeDtypeStruct((N, P, 1, tile), jnp.float32),  # weight partials
        ),
        grid_spec=pltpu.PrefetchScalarGridSpec(
            num_scalar_prefetch=0,
            grid=(N, P, tpp),
            in_specs=[
                pl.BlockSpec((None, C, tile), lambda n, p, t: (n, 0, p * tpp + t)),
                pl.BlockSpec((None, 1, tile), lambda n, p, t: (n, 0, p * tpp + t)),
            ],
            out_specs=[
                pl.BlockSpec((None, None, 1, tile), lambda n, p, t: (n, p, 0, 0)),
                pl.BlockSpec((None, None, 1, tile), lambda n, p, t: (n, p, 0, 0)),
            ],
        ),
        compiler_params=pltpu.CompilerParams(
            dimension_semantics=("parallel", "parallel", "arbitrary"),
            vmem_limit_bytes=32 * 1024 * 1024,
        ),
    )(pred3, tgt3)

    # tiny final reduction + single division in the wrapper
    return jnp.sum(loss_parts) / jnp.sum(w_parts)


def focal_loss_ref(prediction, target, gamma=2.0, alpha=0.25):
    """Pure-JAX reference matching the PyTorch forward."""
    N, C, H, W = prediction.shape
    x = prediction.astype(jnp.float32)
    onehot = jax.nn.one_hot(target[:, 0], C, axis=1, dtype=jnp.float32)  # (N,C,H,W)
    prob = jax.nn.softmax(x, axis=1)
    target_prob = prob * onehot + (1 - prob) * (1 - onehot)
    alpha_w = alpha * onehot + (1 - alpha) * (1 - onehot)
    weight = alpha_w * (1 - target_prob) ** gamma
    bce = jnp.maximum(x, 0.0) - x * onehot + jnp.log1p(jnp.exp(-jnp.abs(x)))
    losses = weight * bce / jnp.sum(weight)
    return jnp.sum(losses)


if __name__ == "__main__":
    key = jax.random.PRNGKey(0)
    k1, k2 = jax.random.split(key)

    N, C, H, W = 2, 4, 16, 16
    prediction = jax.random.normal(k1, (N, C, H, W), dtype=jnp.float32) * 2.0
    target = jax.random.randint(k2, (N, 1, H, W), 0, C, dtype=jnp.int32)

    out = focal_loss_pallas(prediction, target, gamma=2.0, alpha=0.25)
    out = jax.block_until_ready(out)

    ref = focal_loss_ref(prediction, target, gamma=2.0, alpha=0.25)
    assert jnp.allclose(out, ref, rtol=1e-5, atol=1e-6), (out, ref)

    print("KERNEL_OK")
</pallas_src>

<mosaic_0001>
module attributes {stable_mosaic.version = 11 : i64} {
  func.func @_focal_kernel(%arg0: i32, %arg1: i32, %arg2: i32, %arg3: memref<1x4x256xf32, #tpu.memory_space<vmem>>, %arg4: memref<1x1x256xi32, #tpu.memory_space<vmem>>, %arg5: memref<1x1x1x256xf32, #tpu.memory_space<vmem>>, %arg6: memref<1x1x1x256xf32, #tpu.memory_space<vmem>>) attributes {dimension_semantics = [#tpu.dimension_semantics<parallel>, #tpu.dimension_semantics<parallel>, #tpu.dimension_semantics<arbitrary>], iteration_bounds = array<i64: 2, 1, 1>, scalar_prefetch = 0 : i64, scratch_operands = 0 : i64, tpu.core_type = #tpu.core_type<tc>, window_params = [{transform_indices = @transform_0, window_bounds = array<i64: 1, 4, 256>}, {transform_indices = @transform_1, window_bounds = array<i64: 1, 1, 256>}, {transform_indices = @transform_2, window_bounds = array<i64: 1, 1, 1, 256>}, {transform_indices = @transform_3, window_bounds = array<i64: 1, 1, 1, 256>}]} {
    %c0 = arith.constant 0 : index
    %c0_0 = arith.constant 0 : index
    %c0_1 = arith.constant 0 : index
    %0 = vector.load %arg3[%c0, %c0_0, %c0_1] : memref<1x4x256xf32, #tpu.memory_space<vmem>>, vector<1x4x256xf32>
    %1 = vector.shape_cast %0 : vector<1x4x256xf32> to vector<4x256xf32>
    %c0_2 = arith.constant 0 : index
    %c0_3 = arith.constant 0 : index
    %c0_4 = arith.constant 0 : index
    %2 = vector.load %arg4[%c0_2, %c0_3, %c0_4] : memref<1x1x256xi32, #tpu.memory_space<vmem>>, vector<1x1x256xi32>
    %3 = vector.shape_cast %2 : vector<1x1x256xi32> to vector<1x256xi32>
    %4 = tpu.iota {dimensions = array<i32: 0>} : vector<4x256xi32>
    %5 = vector.broadcast %3 : vector<1x256xi32> to vector<4x256xi32>
    %6 = arith.cmpi eq, %4, %5 : vector<4x256xi32>
    %cst = arith.constant dense<0xFF800000> : vector<256xf32>
    %7 = vector.multi_reduction <maximumf>, %1, %cst [0] : vector<4x256xf32> to vector<256xf32>
    %8 = vector.shape_cast %7 : vector<256xf32> to vector<1x256xf32>
    %9 = vector.broadcast %8 : vector<1x256xf32> to vector<4x256xf32>
    %10 = arith.subf %1, %9 : vector<4x256xf32>
    %11 = math.exp %10 : vector<4x256xf32>
    %cst_5 = arith.constant dense<0.000000e+00> : vector<256xf32>
    %12 = vector.multi_reduction <add>, %11, %cst_5 [0] : vector<4x256xf32> to vector<256xf32>
    %13 = vector.shape_cast %12 : vector<256xf32> to vector<1x256xf32>
    %14 = tpu.reciprocal %13 {approx = true} : vector<1x256xf32> -> vector<1x256xf32>
    %15 = arith.mulf %13, %14 : vector<1x256xf32>
    %cst_6 = arith.constant 2.000000e+00 : f32
    %16 = vector.broadcast %cst_6 : f32 to vector<1x256xf32>
    %17 = arith.subf %16, %15 : vector<1x256xf32>
    %18 = arith.mulf %14, %17 : vector<1x256xf32>
    %19 = vector.broadcast %18 : vector<1x256xf32> to vector<4x256xf32>
    %20 = arith.mulf %11, %19 : vector<4x256xf32>
    %cst_7 = arith.constant 1.000000e+00 : f32
    %21 = vector.broadcast %cst_7 : f32 to vector<4x256xf32>
    %22 = arith.subf %21, %20 : vector<4x256xf32>
    %23 = arith.select %6, %22, %20 : vector<4x256xi1>, vector<4x256xf32>
    %cst_8 = arith.constant 2.500000e-01 : f32
    %cst_9 = arith.constant 7.500000e-01 : f32
    %24 = vector.broadcast %cst_8 : f32 to vector<4x256xf32>
    %25 = vector.broadcast %cst_9 : f32 to vector<4x256xf32>
    %26 = arith.select %6, %24, %25 : vector<4x256xi1>, vector<4x256xf32>
    %27 = arith.mulf %23, %23 : vector<4x256xf32>
    %28 = arith.mulf %26, %27 : vector<4x256xf32>
    %cst_10 = arith.constant 0.000000e+00 : f32
    %29 = vector.broadcast %cst_10 : f32 to vector<4x256xf32>
    %30 = arith.maximumf %1, %29 : vector<4x256xf32>
    %cst_11 = arith.constant 0.000000e+00 : f32
    %31 = vector.broadcast %cst_11 : f32 to vector<4x256xf32>
    %32 = arith.select %6, %1, %31 : vector<4x256xi1>, vector<4x256xf32>
    %33 = arith.subf %30, %32 : vector<4x256xf32>
    %34 = math.absf %1 : vector<4x256xf32>
    %cst_12 = arith.constant 0.000000e+00 : f32
    %35 = vector.broadcast %cst_12 : f32 to vector<4x256xf32>
    %36 = arith.subf %35, %34 : vector<4x256xf32>
    %37 = math.exp %36 : vector<4x256xf32>
    %38 = math.log1p %37 : vector<4x256xf32>
    %39 = arith.addf %33, %38 : vector<4x256xf32>
    %40 = arith.mulf %28, %39 : vector<4x256xf32>
    %cst_13 = arith.constant dense<0.000000e+00> : vector<256xf32>
    %41 = vector.multi_reduction <add>, %40, %cst_13 [0] : vector<4x256xf32> to vector<256xf32>
    %42 = vector.shape_cast %41 : vector<256xf32> to vector<1x256xf32>
    %cst_14 = arith.constant dense<0.000000e+00> : vector<256xf32>
    %43 = vector.multi_reduction <add>, %28, %cst_14 [0] : vector<4x256xf32> to vector<256xf32>
    %44 = vector.shape_cast %43 : vector<256xf32> to vector<1x256xf32>
    %c0_i32 = arith.constant 0 : i32
    %45 = arith.cmpi eq, %arg2, %c0_i32 : i32
    %46 = arith.extui %45 : i1 to i32
    %c0_i32_15 = arith.constant 0 : i32
    %47 = arith.cmpi ne, %46, %c0_i32_15 : i32
    scf.if %47 {
      %c0_18 = arith.constant 0 : index
      %c0_19 = arith.constant 0 : index
      %c0_20 = arith.constant 0 : index
      %c0_21 = arith.constant 0 : index
      %51 = vector.load %arg5[%c0_18, %c0_19, %c0_20, %c0_21] : memref<1x1x1x256xf32, #tpu.memory_space<vmem>>, vector<1x1x1x256xf32>
      %52 = vector.shape_cast %51 : vector<1x1x1x256xf32> to vector<1x256xf32>
      %53 = vector.shape_cast %42 : vector<1x256xf32> to vector<1x1x1x256xf32>
      tpu.vector_store %arg5[%c0_18, %c0_19, %c0_20, %c0_21], %53 {strides = array<i32>} : memref<1x1x1x256xf32, #tpu.memory_space<vmem>>, vector<1x1x1x256xf32>,
      %c0_22 = arith.constant 0 : index
      %c0_23 = arith.constant 0 : index
      %c0_24 = arith.constant 0 : index
      %c0_25 = arith.constant 0 : index
      %54 = vector.load %arg6[%c0_22, %c0_23, %c0_24, %c0_25] : memref<1x1x1x256xf32, #tpu.memory_space<vmem>>, vector<1x1x1x256xf32>
      %55 = vector.shape_cast %54 : vector<1x1x1x256xf32> to vector<1x256xf32>
      %56 = vector.shape_cast %44 : vector<1x256xf32> to vector<1x1x1x256xf32>
      tpu.vector_store %arg6[%c0_22, %c0_23, %c0_24, %c0_25], %56 {strides = array<i32>} : memref<1x1x1x256xf32, #tpu.memory_space<vmem>>, vector<1x1x1x256xf32>,
    } else {
    }
    %c0_i32_16 = arith.constant 0 : i32
    %48 = arith.cmpi sgt, %arg2, %c0_i32_16 : i32
    %49 = arith.extui %48 : i1 to i32
    %c0_i32_17 = arith.constant 0 : i32
    %50 = arith.cmpi ne, %49, %c0_i32_17 : i32
    scf.if %50 {
      %c0_18 = arith.constant 0 : index
      %c0_19 = arith.constant 0 : index
      %c0_20 = arith.constant 0 : index
      %c0_21 = arith.constant 0 : index
      %51 = vector.load %arg5[%c0_18, %c0_19, %c0_20, %c0_21] : memref<1x1x1x256xf32, #tpu.memory_space<vmem>>, vector<1x1x1x256xf32>
      %52 = vector.shape_cast %51 : vector<1x1x1x256xf32> to vector<1x256xf32>
      %53 = arith.addf %52, %42 : vector<1x256xf32>
      %c0_22 = arith.constant 0 : index
      %c0_23 = arith.constant 0 : index
      %c0_24 = arith.constant 0 : index
      %c0_25 = arith.constant 0 : index
      %54 = vector.load %arg5[%c0_22, %c0_23, %c0_24, %c0_25] : memref<1x1x1x256xf32, #tpu.memory_space<vmem>>, vector<1x1x1x256xf32>
      %55 = vector.shape_cast %54 : vector<1x1x1x256xf32> to vector<1x256xf32>
      %56 = vector.shape_cast %53 : vector<1x256xf32> to vector<1x1x1x256xf32>
      tpu.vector_store %arg5[%c0_22, %c0_23, %c0_24, %c0_25], %56 {strides = array<i32>} : memref<1x1x1x256xf32, #tpu.memory_space<vmem>>, vector<1x1x1x256xf32>,
      %c0_26 = arith.constant 0 : index
      %c0_27 = arith.constant 0 : index
      %c0_28 = arith.constant 0 : index
      %c0_29 = arith.constant 0 : index
      %57 = vector.load %arg6[%c0_26, %c0_27, %c0_28, %c0_29] : memref<1x1x1x256xf32, #tpu.memory_space<vmem>>, vector<1x1x1x256xf32>
      %58 = vector.shape_cast %57 : vector<1x1x1x256xf32> to vector<1x256xf32>
      %59 = arith.addf %58, %44 : vector<1x256xf32>
      %c0_30 = arith.constant 0 : index
      %c0_31 = arith.constant 0 : index
      %c0_32 = arith.constant 0 : index
      %c0_33 = arith.constant 0 : index
      %60 = vector.load %arg6[%c0_30, %c0_31, %c0_32, %c0_33] : memref<1x1x1x256xf32, #tpu.memory_space<vmem>>, vector<1x1x1x256xf32>
      %61 = vector.shape_cast %60 : vector<1x1x1x256xf32> to vector<1x256xf32>
      %62 = vector.shape_cast %59 : vector<1x256xf32> to vector<1x1x1x256xf32>
      tpu.vector_store %arg6[%c0_30, %c0_31, %c0_32, %c0_33], %62 {strides = array<i32>} : memref<1x1x1x256xf32, #tpu.memory_space<vmem>>, vector<1x1x1x256xf32>,
    } else {
    }
    return
  }
  func.func @transform_0(%arg0: i32, %arg1: i32, %arg2: i32) -> (i32, i32, i32) {
    %c1_i32 = arith.constant 1 : i32
    %0 = arith.muli %arg1, %c1_i32 : i32
    %1 = arith.addi %0, %arg2 : i32
    %c0_i32 = arith.constant 0 : i32
    %c0_i32_0 = arith.constant 0 : i32
    return %arg0, %c0_i32, %1 : i32, i32, i32
  }
  func.func @transform_1(%arg0: i32, %arg1: i32, %arg2: i32) -> (i32, i32, i32) {
    %c1_i32 = arith.constant 1 : i32
    %0 = arith.muli %arg1, %c1_i32 : i32
    %1 = arith.addi %0, %arg2 : i32
    %c0_i32 = arith.constant 0 : i32
    %c0_i32_0 = arith.constant 0 : i32
    return %arg0, %c0_i32, %1 : i32, i32, i32
  }
  func.func @transform_2(%arg0: i32, %arg1: i32, %arg2: i32) -> (i32, i32, i32, i32) {
    %c0_i32 = arith.constant 0 : i32
    %c0_i32_0 = arith.constant 0 : i32
    %c0_i32_1 = arith.constant 0 : i32
    return %arg0, %arg1, %c0_i32, %c0_i32_0 : i32, i32, i32, i32
  }
  func.func @transform_3(%arg0: i32, %arg1: i32, %arg2: i32) -> (i32, i32, i32, i32) {
    %c0_i32 = arith.constant 0 : i32
    %c0_i32_0 = arith.constant 0 : i32
    %c0_i32_1 = arith.constant 0 : i32
    return %arg0, %arg1, %c0_i32, %c0_i32_0 : i32, i32, i32, i32
  }
}

</mosaic_0001>

<bundles_post_ra>
// kernel: tpu_custom_call.1
= control target key start
LH: loop header
LB: loop body
LE: loop exit
PB: predicated region body
PF: predicated region fallthrough
CT: control target
= control target key end

     0   :  { %9 = vsyncpa [#allocation3], 0  ;;  %s1187_s0 = inlined_call_operand.hbm [shape: f32[2,4,256], index: 0, kind: input, shape index: {}]   ;;  %s1188_s1 = inlined_call_operand.hbm [shape: s32[2,1,256], index: 1, kind: input, shape index: {}]   ;;  %s1189_s2 = inlined_call_operand.hbm [shape: f32[2,1,1,256], index: 2, kind: output, shape index: {0}]   ;;  %s1190_s3 = inlined_call_operand.hbm [shape: f32[2,1,1,256], index: 3, kind: output, shape index: {1}]  }
   0x1   :  { %11 = vsyncpa [#allocation3 + $0x1], 0 }
   0x2   :  { %12 = vsyncpa [#allocation6], 0 }
   0x3   :  { %14 = vsyncpa [#allocation6 + $0x1], 0 }
   0x4   :  { %15 = vsyncpa [#allocation4], 0 }
   0x5   :  { %17 = vsyncpa [#allocation4 + $0x1], 0 }
   0x6   :  { %18 = vsyncpa [#allocation9], 0 }
   0x7   :  { %20 = vsyncpa [#allocation9 + $0x1], 0  ;;  %s974_s12 = smov 0   ;;  %s976_s13 = smov 0  }
   0x8   :  { %s978_s14 = smov 0   ;;  %s980_s15 = smov 0  }
   0x9   :  { %s982_s16 = smov 0   ;;  %s984_s17 = smov 0  }
   0xa LB: > { %s669_s18 = sadd.s32 4294967295, %s951_s17   ;;  %s670_s19 = sadd.s32 4294967294, %s951_s17   ;;  %s951_s17 = sphi %s984_s17, %s26_s17   ;;  %s947_s16 = sphi %s982_s16, %s1206_s16   ;;  %s943_s15 = sphi %s980_s15, %s1205_s15   ;;  %s939_s14 = sphi %s978_s14, %s1204_s14   ;;  %s935_s13 = sphi %s976_s13, %s1203_s13   ;;  %s931_s12 = sphi %s974_s12, %s1202_s12  }
   0xb   : > { %s45_s20 = sadd.s32 1, %s947_s16  ;;  %s56_s21 = sadd.s32 1, %s939_s14 }
   0xc   : > { %p47_p0 = scmp.ge.s32.totalorder %s45_s20, 2  ;;  %p63_p1 = scmp.ne.s32.totalorder %s939_s14, %s935_s13 }
   0xd   : > { %p64_p2 = scmp.eq.s32.totalorder %s951_s17, 0  ;;  %p69_p3 = scmp.ne.s32.totalorder %s935_s13, %s931_s12 }
   0xe   : > { %s1208_s20 = smov (%p47_p0, %s45_s20), 0  ;;  %p70_p5 = scmp.eq.s32.totalorder %s669_s18, 0 }
   0xf   : > { %p1015_p4 = por %p64_p2, %p63_p1  ;;  %s51_s23 = ssub.s32 %s947_s16, %s1208_s20 }
  0x10   : > { %p125_p6 = scmp.eq.s32.totalorder %s669_s18, 1  ;;  %p54_p7 = scmp.eq.s32.totalorder %s51_s23, 0 }
  0x11   : > { %p1021_p8 = por %p70_p5, %p69_p3  ;;  %p131_p10 = scmp.eq.s32.totalorder %s670_s19, 1 }
  0x12   : > { %p1025_p9 = por %p125_p6, %p63_p1  ;;  %p672_p12 = scmp.ge.s32.totalorder %s951_s17, 2 }
  0x13   : > { %s1030_s26 = scalar_select %p54_p7, %s939_s14, %s56_s21  }
  0x14   : > { %p1032_p11 = por %p131_p10, %p69_p3  ;;  %p712_p13 = scmp.lt.s32.totalorder %s951_s17, 2 }
  0x15   : > { %s179_s28 = sand.u32 1, %s939_s14   ;;  %s689_s30 = sshll.u32 %s947_s16, 3 }
  0x16   : > { %s673_s29 = sshll.u32 %s179_s28, 3  ;;  %s191_s6 = scalar_lea.hbm %s1187_s0, %s689_s30 }
  0x17   : > { %s183_s7 = scalar_lea.vmem [#allocation2], %s673_s29  ;;  %s193_s9 = sshll.u32 %s191_s6, 4  ;;  %s194_s9 = int_to_ptr.hbm [resolvable:$true] %s193_s9 }
  0x18   : > { %s195_s8 = sshll.u32 %s183_s7, 4  ;;  %p1045_p0 = pnand %p712_p13, %p1015_p4  ;;  %s196_s8 = int_to_ptr.vmem [resolvable:$true] %s195_s8 }
  0x19   : > { %p678_p1 = scmp.ge.s32.totalorder %s951_s17, 1  ;;  %p222_p2 = scmp.lt.s32.totalorder %s951_s17, 3 }
  0x1a   : > { %s180_s11 = scalar_lea.sflag [#allocation3], %s179_s28  ;;  %s676_s18 = sshll.u32 %s179_s28, 1 }
  0x1b   : > { %701 = dma.hbm_to_vmem [thread:$0]  (!%p1045_p0), %s194_s9, 128, %s196_s8, %s180_s11  }
  0x1c   : > { %p223_p3 = pnand %p678_p1, %p222_p2  ;;  %s677_s19 = sshll.u32 %s947_s16, 1 }
  0x1d   : > { %s213_s29 = scalar_lea.hbm %s1188_s1, %s677_s19  ;;  %s206_s30 = scalar_lea.vmem [#allocation5], %s676_s18 }
  0x1e   : > { %s217_s22 = sshll.u32 %s206_s30, 4  ;;  %s215_s4 = sshll.u32 %s213_s29, 4  ;;  %s218_s22 = int_to_ptr.vmem [resolvable:$true] %s217_s22  ;;  %s216_s4 = int_to_ptr.hbm [resolvable:$true] %s215_s4 }
  0x1f   : > { %s203_s5 = scalar_lea.sflag [#allocation6], %s179_s28  ;;  %226 = sbr.rel (%p223_p3) target bundleno = 180 (0xb4), region = 28 }
  0x20   : > { %704 = dma.hbm_to_vmem [thread:$0]  (!%p1045_p0), %s216_s4, 32, %s218_s22, %s203_s5  }
  0x21   : > { %s1060_s6 = sand.u32 (!%p223_p3), 1, %s935_s13  }
  0x22   : > { %s679_s7 = sshll.u32 (!%p223_p3), %s1060_s6, 3  ;;  %s229_s8 = scalar_lea.sflag (!%p223_p3), [#allocation3], %s1060_s6 }
  0x23   : > { %s232_s9 = scalar_lea.vmem (!%p223_p3), [#allocation2], %s679_s7 }
  0x24   : > { %914 = dma.done.wait (%p1021_p8), %s229_s8, 128  }
  0x25   : > { %916 = vsyncadd (%p1021_p8), %s229_s8, 4294967168  ;;  %s1069_s28 = sshll.u32 %s1060_s6, 1  ;;  %s239_s10 = scalar_lea.sflag [#allocation6], %s1060_s6 }
  0x26   : > { %s242_s11 = scalar_lea.vmem [#allocation5], %s1069_s28 }
  0x27   : > { %918 = dma.done.wait (%p1021_p8), %s239_s10, 32  }
  0x28   : > { %920 = vsyncadd (%p1021_p8), %s239_s10, 4294967264  ;;  %v1077_v0 = vld [vmem:[%s232_s9] sm:$0xff]  ;;  %vm294_vm0 = vcmask 1043456   ;;  %v282_v53 = vlaneseq  ;;  %v281_v55 = vld [vmem:[%s242_s11] sm:$0x3]  ;;  %s685_s24 = sshll.u32 %s943_s15, 1 }
  0x29   : > { %289 = vst [vmem:[#allocation1] ss:$2 sm:$0xff] %v1077_v0  ;;  %v386_v42 = vand.u32 2147483647, %v1077_v0  ;;  %v284_v60 = vperm.slane %v281_v55, 0  ;;  %v285_v61 = vperm.slane %v281_v55, 1  ;;  %s516_s21 = scalar_lea.hbm %s1190_s3, %s685_s24 }
  0x2a   : > { %v283_v59 = vshrl.u32 %v282_v53, 7  ;;  %s275_s23 = scalar_lea.vmem [#allocation8], %s1069_s28  ;;  %s520_s30 = sshll.u32 %s516_s21, 4  ;;  %vm443_vm4 = vcmask 1040384   ;;  %vm1124_vm5 = vcmp.lt.s32.totalorder %v282_v53, 256  ;;  %s521_s30 = int_to_ptr.hbm [resolvable:$true] %s520_s30 }
  0x2b   : > { %v387_v46 = vsub.f32 0.0, %v386_v42  ;;  %s518_s29 = sshll.u32 %s275_s23, 4  ;;  %s488_s22 = scalar_lea.sflag [#allocation9], %s1060_s6  ;;  %s519_s29 = int_to_ptr.vmem [resolvable:$true] %s518_s29 }
  0x2c   : > { %vm1091_vm1 = vcmp.eq.s32.totalorder %v283_v59, %v284_v60  ;;  %vm1095_vm2 = vcmp.eq.s32.totalorder %v283_v59, %v285_v61  ;;  %s847_s4 = sshra.s32 %s521_s30, 4  ;;  %s853_s9 = scalar_lea.hbm %s1190_s3, 4  ;;  %s848_s4 = int_to_ptr.hbm [resolvable:$true] %s847_s4 }
  0x2d   : > { %v388_v50 = vmul.f32 1.442695, %v387_v46  ;;  %s849_s5 = scalar_lea.hbm %s848_s4, 2  ;;  %p854_p7 = scmp.lt.s32.totalorder %s848_s4, %s1190_s3 }
  0x2e   : > { %p850_p4 = scmp.ne.s32.totalorder %s848_s4, %s849_s5  ;;  %p855_p8 = scmp.lt.s32.totalorder %s853_s9, %s849_s5 }
  0x30   : > { %v290_v1 = vld.sshfl [vmem:[#allocation1] sm:$0xff pattern:$0x75316420]  ;;  %v291_v2 = vld.sshfl [vmem:[#allocation1 + $0x8] sm:$0xff pattern:$0x75316420]  ;;  %p851_p5 = pnand %p850_p4, %p1025_p9  ;;  %p856_p10 = por %p855_p8, %p854_p7 }
  0x31   : > { %v295_v3 = vsel %vm294_vm0, %v290_v1, -inf  ;;  %v302_v4 = vsel %vm294_vm0, %v291_v2, -inf }
  0x32   : > { %v296_v5 = vrot.slane %v295_v3, 4  ;;  %v303_v6 = vrot.slane %v302_v4, 4  ;;  %p852_p6 = pneg %p851_p5 }
  0x34   : > { %v297_v7 = vmax.f32 %v295_v3, %v296_v5  ;;  %v304_v8 = vmax.f32 %v302_v4, %v303_v6  ;;  %v953_v6 = vmov 0.75   ;;  %p857_p13 = pnand %p856_p10, %p852_p6 }
  0x36   : > { %v298_v9 = vrot.slane %v297_v7, 2  ;;  %v305_v10 = vrot.slane %v304_v8, 2 }
  0x38   : > { %v299_v11 = vmax.f32 %v297_v7, %v298_v9  ;;  %v306_v12 = vmax.f32 %v304_v8, %v305_v10  ;;  %v366_v7 = vsel %vm1091_vm1, 0.25, %v953_v6  ;;  %v367_v8 = vsel %vm1095_vm2, 0.25, %v953_v6 }
  0x3a   : > { %v300_v13 = vrot.slane %v299_v11, 1  ;;  %v307_v14 = vrot.slane %v306_v12, 1 }
  0x3c   : > { %v308_v15 = vmax.f32 %v306_v12, %v307_v14  ;;  %v301_v16 = vmax.f32 %v299_v11, %v300_v13 }
  0x3e   : > { %v311_v17 = vrot.slane %v308_v15, 4 }
  0x40   : > { %v312_v18 = vsel %vm294_vm0, %v301_v16, %v311_v17 }
  0x41   : > { %v314_v19 = vsub.f32 %v1077_v0, %v312_v18  ;;  %v372_v18 = vmax.f32 %v1077_v0, 0.0 }
  0x43   : > { %v315_v20 = vmul.f32 1.442695, %v314_v19 }
  0x45   : > { %763 = vpow2.f32 %v315_v20 }
  0x4b   : > { %v764_v21 = vpop.eup %763 }
  0x4c   : > { %318 = vst [vmem:[#allocation1] ss:$2 sm:$0xff] %v764_v21 }
  0x53   : > { %v319_v22 = vld.sshfl [vmem:[#allocation1] sm:$0xff pattern:$0x75316420]  ;;  %v320_v23 = vld.sshfl [vmem:[#allocation1 + $0x8] sm:$0xff pattern:$0x75316420] }
  0x54   : > { %v323_v24 = vsel %vm294_vm0, %v319_v22, 0.0  ;;  %v330_v25 = vsel %vm294_vm0, %v320_v23, 0.0 }
  0x55   : > { %v324_v26 = vrot.slane %v323_v24, 4  ;;  %v331_v27 = vrot.slane %v330_v25, 4 }
  0x57   : > { %v325_v28 = vadd.f32 %v324_v26, %v323_v24  ;;  %v332_v29 = vadd.f32 %v331_v27, %v330_v25 }
  0x59   : > { %v326_v30 = vrot.slane %v325_v28, 2  ;;  %v333_v31 = vrot.slane %v332_v29, 2 }
  0x5b   : > { %v327_v32 = vadd.f32 %v326_v30, %v325_v28  ;;  %v334_v33 = vadd.f32 %v333_v31, %v332_v29 }
  0x5d   : > { %v328_v34 = vrot.slane %v327_v32, 1  ;;  %v335_v35 = vrot.slane %v334_v33, 1 }
  0x5f   : > { %v329_v36 = vadd.f32 %v328_v34, %v327_v32  ;;  %v336_v37 = vadd.f32 %v335_v35, %v334_v33 }
  0x61   : > { %765 = vrcp.f32 %v329_v36 }
  0x62   : > { %767 = vrcp.f32 %v336_v37 }
  0x63   : > { %769 = vpow2.f32 %v388_v50 }
  0x67   : > { %v766_v38 = vpop.eup %765 }
  0x68   : > { %v768_v39 = vpop.eup %767  ;;  %v339_v40 = vmul.f32 %v766_v38, %v329_v36 }
  0x69   : > { %v340_v41 = vmul.f32 %v768_v39, %v336_v37  ;;  %v770_v54 = vpop.eup %769 }
  0x6a   : > { %v341_v43 = vsub.f32 2.0, %v339_v40  ;;  %v390_v58 = vadd.f32 1.0, %v770_v54  ;;  %v393_v1 = vmul.f32 -0.5, %v770_v54  ;;  %v396_v15 = vand.u32 2147483647, %v770_v54 }
  0x6b   : > { %v342_v44 = vsub.f32 2.0, %v340_v41 }
  0x6c   : > { %v343_v47 = vmul.f32 %v766_v38, %v341_v43  ;;  %771 = vlog2.f32 %v390_v58  ;;  %v394_v12 = vadd.f32 1.0, %v393_v1  ;;  %vm397_vm3 = vcmp.lt.f32.partialorder %v396_v15, 0.0004427343 }
  0x6d   : > { %v344_v45 = vmul.f32 %v768_v39, %v342_v44 }
  0x6e   : > { %v395_v22 = vmul.f32 %v770_v54, %v394_v12 }
  0x6f   : > { %v347_v48 = vrot.slane %v344_v45, 4 }
  0x71   : > { %v348_v49 = vsel %vm294_vm0, %v343_v47, %v347_v48 }
  0x72   : > { %v350_v51 = vmul.f32 %v764_v21, %v348_v49  ;;  %v772_v11 = vpop.eup %771 }
  0x73   : > { %v392_v19 = vmul.f32 0.6931472, %v772_v11 }
  0x74   : > { %v351_v52 = vsub.f32 1.0, %v350_v51 }
  0x75   : > { %v398_v32 = vsel %vm397_vm3, %v395_v22, %v392_v19 }
  0x76   : > { %353 = vst [vmem:[#allocation1] ss:$2 sm:$0xff] %v351_v52 }
  0x7d   : > { %v354_v56 = vld.sshfl [vmem:[#allocation1] sm:$0xff pattern:$0x75316420]  ;;  %v355_v57 = vld.sshfl [vmem:[#allocation1 + $0x8] sm:$0xff pattern:$0x75316420] }
  0x7e   : > { %359 = vst [vmem:[#allocation1] ss:$2 sm:$0xff] %v350_v51 }
  0x85   : > { %v360_v2 = vld.sshfl [vmem:[#allocation1] sm:$0xff pattern:$0x75316420]  ;;  %v361_v3 = vld.sshfl [vmem:[#allocation1 + $0x8] sm:$0xff pattern:$0x75316420] }
  0x86   : > { %373 = vst [vmem:[#allocation1] ss:$2 sm:$0xff] %v1077_v0  ;;  %v364_v4 = vsel %vm1091_vm1, %v354_v56, %v360_v2  ;;  %v365_v5 = vsel %vm1095_vm2, %v355_v57, %v361_v3 }
  0x87   : > { %v368_v9 = vmul.f32 %v364_v4, %v364_v4  ;;  %v369_v10 = vmul.f32 %v365_v5, %v365_v5 }
  0x89   : > { %v370_v13 = vmul.f32 %v368_v9, %v366_v7  ;;  %v371_v14 = vmul.f32 %v369_v10, %v367_v8 }
  0x8b   : > { %v422_v16 = vsel %vm294_vm0, %v370_v13, 0.0  ;;  %v429_v17 = vsel %vm294_vm0, %v371_v14, 0.0 }
  0x8c   : > { %v423_v20 = vrot.slane %v422_v16, 4  ;;  %v430_v21 = vrot.slane %v429_v17, 4 }
  0x8d   : > { %v374_v23 = vld.sshfl [vmem:[#allocation1] sm:$0xff pattern:$0x75316420]  ;;  %v375_v24 = vld.sshfl [vmem:[#allocation1 + $0x8] sm:$0xff pattern:$0x75316420] }
  0x8e   : > { %v379_v25 = vsel %vm1095_vm2, %v375_v24, 0.0  ;;  %v424_v26 = vadd.f32 %v423_v20, %v422_v16  ;;  %v431_v27 = vadd.f32 %v430_v21, %v429_v17  ;;  %v378_v29 = vsel %vm1091_vm1, %v374_v23, 0.0 }
  0x8f   : > { %v382_v28 = vrot.slane %v379_v25, 4 }
  0x90   : > { %v425_v30 = vrot.slane %v424_v26, 2  ;;  %v432_v0 = vrot.slane %v431_v27, 2 }
  0x91   : > { %v383_v31 = vsel %vm294_vm0, %v378_v29, %v382_v28 }
  0x92   : > { %v385_v33 = vsub.f32 %v372_v18, %v383_v31  ;;  %v426_v34 = vadd.f32 %v425_v30, %v424_v26  ;;  %v433_v35 = vadd.f32 %v432_v0, %v431_v27 }
  0x94   : > { %v399_v36 = vadd.f32 %v398_v32, %v385_v33  ;;  %v427_v37 = vrot.slane %v426_v34, 1  ;;  %v434_v38 = vrot.slane %v433_v35, 1 }
  0x96   : > { %401 = vst [vmem:[#allocation1] ss:$2 sm:$0xff] %v399_v36  ;;  %v435_v39 = vadd.f32 %v434_v38, %v433_v35  ;;  %v428_v40 = vadd.f32 %v427_v37, %v426_v34 }
  0x98   : > { %v453_v42 = vrot.slane %v435_v39, 7 }
  0x9a   : > { %v454_v43 = vsel %vm443_vm4, %v428_v40, %v453_v42 }
  0x9b   : > { %456 = vst.msk [vmem:[%s275_s23] sm:$0x3] %vm1124_vm5, %v454_v43 }
  0x9c   : > { %860 = shalt.err (!%p857_p13)
}
  0x9d   : > { %695 = dma.vmem_to_hbm [thread:$0]  (%p1025_p9), %s519_s29, 32, %s521_s30, %s488_s22   ;;  %v402_v44 = vld.sshfl [vmem:[#allocation1] sm:$0xff pattern:$0x75316420] }
  0x9e   : > { %v403_v45 = vld.sshfl [vmem:[#allocation1 + $0x8] sm:$0xff pattern:$0x75316420]  ;;  %v406_v46 = vmul.f32 %v402_v44, %v370_v13  ;;  %s500_s21 = scalar_lea.hbm %s1189_s2, %s685_s24  ;;  %s268_s23 = scalar_lea.vmem [#allocation7], %s1069_s28 }
  0x9f   : > { %v407_v47 = vmul.f32 %v403_v45, %v371_v14  ;;  %s502_s29 = sshll.u32 %s268_s23, 4  ;;  %s504_s30 = sshll.u32 %s500_s21, 4  ;;  %s503_s29 = int_to_ptr.vmem [resolvable:$true] %s502_s29  ;;  %s505_s30 = int_to_ptr.hbm [resolvable:$true] %s504_s30 }
  0xa0   : > { %v408_v48 = vsel %vm294_vm0, %v406_v46, 0.0  ;;  %s483_s15 = scalar_lea.sflag [#allocation4], %s1060_s6  ;;  %s875_s22 = sshra.s32 %s505_s30, 4  ;;  %s876_s22 = int_to_ptr.hbm [resolvable:$true] %s875_s22 }
  0xa1   : > { %v415_v49 = vsel %vm294_vm0, %v407_v47, 0.0  ;;  %v409_v50 = vrot.slane %v408_v48, 4  ;;  %s877_s24 = scalar_lea.hbm %s876_s22, 2  ;;  %s881_s5 = scalar_lea.hbm %s1189_s2, 4 }
  0xa2   : > { %v416_v51 = vrot.slane %v415_v49, 4  ;;  %p878_p0 = scmp.ne.s32.totalorder %s876_s22, %s877_s24  ;;  %p882_p3 = scmp.lt.s32.totalorder %s876_s22, %s1189_s2 }
  0xa3   : > { %v410_v52 = vadd.f32 %v409_v50, %v408_v48  ;;  %p883_p4 = scmp.lt.s32.totalorder %s881_s5, %s877_s24 }
  0xa4   : > { %v417_v53 = vadd.f32 %v416_v51, %v415_v49  ;;  %p879_p1 = pnand %p878_p0, %p1025_p9 }
  0xa5   : > { %v411_v54 = vrot.slane %v410_v52, 2  ;;  %p884_p5 = por %p883_p4, %p882_p3 }
  0xa6   : > { %v418_v55 = vrot.slane %v417_v53, 2  ;;  %p880_p2 = pneg %p879_p1 }
  0xa7   : > { %v412_v56 = vadd.f32 %v411_v54, %v410_v52 }
  0xa8   : > { %v419_v57 = vadd.f32 %v418_v55, %v417_v53  ;;  %p885_p6 = pnand %p884_p5, %p880_p2 }
  0xa9   : > { %v413_v58 = vrot.slane %v412_v56, 1 }
  0xaa   : > { %v420_v59 = vrot.slane %v419_v57, 1 }
  0xab   : > { %v414_v61 = vadd.f32 %v413_v58, %v412_v56 }
  0xac   : > { %v421_v60 = vadd.f32 %v420_v59, %v419_v57 }
  0xae   : > { %v442_v62 = vrot.slane %v421_v60, 7 }
  0xb0   : > { %v444_v63 = vsel %vm443_vm4, %v414_v61, %v442_v62 }
  0xb1   : > { %450 = vst.msk [vmem:[%s268_s23] sm:$0x3] %vm1124_vm5, %v444_v63 }
  0xb2   : > { %888 = shalt.err (!%p885_p6)
}
  0xb3   : > { %694 = dma.vmem_to_hbm [thread:$0]  (%p1025_p9), %s503_s29, 32, %s505_s30, %s483_s15  }
  0xb4 PF: > { %s532_s6 = sand.u32 1, %s931_s12   ;;  %p706_p7 = pnand %p672_p12, %p1032_p11 }
  0xb5   : > { %s533_s9 = scalar_lea.sflag [#allocation4], %s532_s6 }
  0xb6   : > { %p707_p8 = pneg %p706_p7 }
  0xb8   : > { %922 = dma.done.wait (%p707_p8), %s533_s9, 32  }
  0xb9   : > { %924 = vsyncadd (%p707_p8), %s533_s9, 4294967264  ;;  %s543_s10 = scalar_lea.sflag [#allocation9], %s532_s6 }
  0xba   : > { %926 = dma.done.wait (%p707_p8), %s543_s10, 32  }
  0xbb   : > { %928 = vsyncadd (%p707_p8), %s543_s10, 4294967264  ;;  %s26_s17 = sadd.s32 1, %s951_s17   ;;  %s1202_s12 = smov %s935_s13 }
  0xbc   : > { %p23_p10 = scmp.ge.s32.totalorder %s26_s17, 4   ;;  %s1203_s13 = smov %s939_s14 }
  0xbd   : > { %s1204_s14 = smov %s1030_s26  ;;  %s1205_s15 = smov %s947_s16 }
  0xbe   : > { %s1206_s16 = smov %s1208_s20  ;;  %25 = sbr.rel (!%p23_p10) target bundleno = 10 (0xa), region = 111 }
  0xc3   :  { %549 = vsyncpa [#allocation3], 1 }
  0xc4   :  { %551 = vsyncpa [#allocation3 + $0x1], 1 }
  0xc5   :  { %552 = vsyncpa [#allocation6], 1 }
  0xc6   :  { %554 = vsyncpa [#allocation6 + $0x1], 1 }
  0xc7   :  { %555 = vsyncpa [#allocation4], 1 }
  0xc8   :  { %557 = vsyncpa [#allocation4 + $0x1], 1 }
  0xc9   :  { %558 = vsyncpa [#allocation9], 1 }
  0xca   :  { %560 = vsyncpa [#allocation9 + $0x1], 1 }

</bundles_post_ra>
